<compile_context>
chip_gen: v7x
topology: tpu7x:2x2x1
jax: 0.10.0
libtpu: 0.0.40
codegen_flags: <defaults>
</compile_context>

<pallas_src>
import numpy as np

import jax
import jax.numpy as jnp
from jax import lax
from jax.experimental import pallas as pl
from jax.experimental.pallas import tpu as pltpu

_EPS = 1e-5


def _resblock_kernel(x_ref, b1_ref, b2_ref, sh_ref, g_ref, gt_ref,
                     gam1_ref, bet1_ref, gam2_ref, bet2_ref, fs_ref, out_ref):
    """Fused ResNet basic block on a lane-dense (M, Wc) slab.

    x_ref    : (M, Wc)      input slab, M = N*H rows, Wc = W*C lanes
    b1_ref   : (3, Wc, Wc)  conv1 banded weights (one matrix per dy tap)
    b2_ref   : (3, Wc, Wc)  conv2 banded weights
    sh_ref   : (3, M, M)    per-dy row-shift matrices (block-diag over samples)
    g_ref    : (Wc, C)      lane -> channel gather matrix
    gt_ref   : (C, Wc)      channel -> lane broadcast matrix
    gam*/bet*: (1, C)       BN affine parameters
    fs_ref   : (2, M, Wc)   filter_select broadcast to slab layout
    out_ref  : (M, Wc)
    """
    f32 = jnp.float32
    x = x_ref[...]                                    # (M, Wc) — also the residual
    M, wc = x.shape
    n_ch = g_ref.shape[1]
    inv_cnt = 1.0 / float(M * (wc // n_ch))           # 1 / (N*H*W)

    gmat = g_ref[...]                                 # (Wc, C)
    gtmat = gt_ref[...]                               # (C, Wc)

    def conv(inp, b_ref):
        """3x3 conv, stride 1, pad 1:  sum_dy SH[dy] @ (inp @ B[dy])."""
        z = jnp.zeros((M, b_ref.shape[2]), f32)
        for dy in range(3):                                               # unrolled
            t = jnp.dot(inp, b_ref[dy], preferred_element_type=f32)      # (M, Wc)
            z = z + jnp.dot(sh_ref[dy], t, preferred_element_type=f32)   # (M, Wc)
        return z

    def batchnorm(z, gamma, beta):
        """Training-mode BN (biased batch stats), stable two-pass form."""
        mean_c = jnp.dot(jnp.sum(z, axis=0, keepdims=True), gmat,
                         preferred_element_type=f32) * inv_cnt            # (1, C)
        cen = z - jnp.dot(mean_c, gtmat, preferred_element_type=f32)      # (M, Wc)
        var_c = jnp.dot(jnp.sum(cen * cen, axis=0, keepdims=True), gmat,
                        preferred_element_type=f32) * inv_cnt             # (1, C)
        scale_c = gamma * lax.rsqrt(var_c + _EPS)                         # (1, C)
        return (cen * jnp.dot(scale_c, gtmat, preferred_element_type=f32)
                + jnp.dot(beta, gtmat, preferred_element_type=f32))

    # conv1 -> bn1 -> relu -> * filter_select[:, 0, :]
    y = conv(x, b1_ref)
    y = batchnorm(y, gam1_ref[...], bet1_ref[...])
    y = jnp.maximum(y, 0.0) * fs_ref[0]

    # conv2 -> bn2 -> + residual -> relu -> * filter_select[:, 1, :]
    z = conv(y, b2_ref)
    z = batchnorm(z, gam2_ref[...], bet2_ref[...])
    z = jnp.maximum(z + x, 0.0) * fs_ref[1]

    out_ref[...] = z.astype(out_ref.dtype)


def _structural_constants(N, H, W, C):
    """Compile-time numpy constants encoding conv structure and lane layout."""
    # dx band pattern: E[dx][w_in, w_out] = 1 iff w_out - w_in == 1 - dx
    E = np.stack([np.eye(W, k=1 - dx, dtype=np.float32) for dx in range(3)])
    # Row shifts on the slab (block-diag over samples; H-padding via offset eye)
    SH = np.stack([np.kron(np.eye(N, dtype=np.float32),
                           np.eye(H, k=dy - 1, dtype=np.float32))
                   for dy in range(3)])                                  # (3, M, M)
    # lane (w*C + c) <-> channel pooling / broadcast
    G = np.kron(np.ones((W, 1), np.float32), np.eye(C, dtype=np.float32))  # (Wc, C)
    return E, SH, G


@jax.jit
def selected_resnet_block(x_nchw, filter_select, w1, w2, g1, b1, g2, b2):
    """x_nchw: (N, C, H, W); filter_select: (N, 2, Cout). Returns (N, Cout, H, W)."""
    f32 = jnp.float32
    N, Cin, H, W = x_nchw.shape
    Cout = w1.shape[-1]
    assert Cin == Cout, "residual path requires in_channel == out_channel"
    M, Wc = N * H, W * Cout

    E, SH, G = _structural_constants(N, H, W, Cout)

    # NCHW -> NHWC -> lane-dense (N*H, W*C) slab.
    x_slab = jnp.transpose(x_nchw, (0, 2, 3, 1)).astype(f32).reshape(M, W * Cin)

    # Banded conv weights: fold dx taps + channel mixing into one (Wc, Wc)
    # matrix per dy tap.  B[dy][w_in*C+ci, w_out*C+co] = w[dy, dx, ci, co]
    # where w_out - w_in = 1 - dx (W-boundary zero padding via the band).
    def banded(w):  # (3, 3, Cin, Cout) -> (3, W*Cin, W*Cout)
        return jnp.einsum("xab,yxio->yaibo", E, w.astype(f32)).reshape(
            3, W * Cin, W * Cout)

    B1 = banded(w1)
    B2 = banded(w2)

    # filter_select -> slab layout: FS[k, n*H + h, w*C + c] = fs[n, k, c]
    fs_t = jnp.transpose(filter_select.astype(f32), (1, 0, 2))        # (2, N, C)
    FS = jnp.broadcast_to(fs_t[:, :, None, None, :],
                          (2, N, H, W, Cout)).reshape(2, M, Wc)

    gam1 = g1.reshape(1, Cout).astype(f32)
    bet1 = b1.reshape(1, Cout).astype(f32)
    gam2 = g2.reshape(1, Cout).astype(f32)
    bet2 = b2.reshape(1, Cout).astype(f32)

    args = (x_slab, B1, B2, jnp.asarray(SH), jnp.asarray(G),
            jnp.asarray(G.T.copy()), gam1, bet1, gam2, bet2, FS)

    # Every operand is small; give the kernel the full arrays (block == array).
    in_specs = [pl.BlockSpec(tuple(a.shape), lambda i, nd=a.ndim: (0,) * nd)
                for a in args]

    out_slab = pl.pallas_call(
        _resblock_kernel,
        out_shape=jax.ShapeDtypeStruct((M, Wc), jnp.float32),
        grid_spec=pltpu.PrefetchScalarGridSpec(
            num_scalar_prefetch=0,
            grid=(1,),
            in_specs=in_specs,
            out_specs=pl.BlockSpec((M, Wc), lambda i: (0, 0)),
        ),
        compiler_params=pltpu.CompilerParams(
            dimension_semantics=("arbitrary",)),
    )(*args)

    # (N*H, W*C) -> NHWC -> NCHW
    return jnp.transpose(out_slab.reshape(N, H, W, Cout), (0, 3, 1, 2))


def _reference(x_nchw, fs, w1, w2, g1, b1, g2, b2):
    """Pure-JAX reference (NHWC internally), same semantics as the kernel."""
    x = jnp.transpose(x_nchw, (0, 2, 3, 1)).astype(jnp.float32)

    def conv(v, w):
        return lax.conv_general_dilated(
            v, w, (1, 1), ((1, 1), (1, 1)),
            dimension_numbers=("NHWC", "HWIO", "NHWC"))

    def bn(v, g, b):
        mean = jnp.mean(v, axis=(0, 1, 2), keepdims=True)
        var = jnp.mean((v - mean) ** 2, axis=(0, 1, 2), keepdims=True)
        return (v - mean) * lax.rsqrt(var + _EPS) * g + b

    out = conv(x, w1)
    out = bn(out, g1, b1)
    out = jnp.maximum(out, 0.0)
    out = out * fs[:, 0, :][:, None, None, :]
    out = conv(out, w2)
    out = bn(out, g2, b2)
    out = out + x
    out = jnp.maximum(out, 0.0)
    out = out * fs[:, 1, :][:, None, None, :]
    return jnp.transpose(out, (0, 3, 1, 2))


if __name__ == "__main__":
    # Small shapes consistent with the module: in_channel = out_channel = 4,
    # stride = 1, downsample = None.
    N, C, H, W = 2, 4, 16, 16

    key = jax.random.PRNGKey(0)
    kx, kfs, kw1, kw2, kg1, kb1, kg2, kb2 = jax.random.split(key, 8)

    x = jax.random.normal(kx, (N, C, H, W), jnp.float32)             # NCHW like PyTorch
    filter_select = jax.random.uniform(kfs, (N, 2, C), jnp.float32)  # (batch, 2, out_channel)

    # Deterministic "parameter init" (HWIO conv weights, BN affine params).
    w1 = 0.1 * jax.random.normal(kw1, (3, 3, C, C), jnp.float32)
    w2 = 0.1 * jax.random.normal(kw2, (3, 3, C, C), jnp.float32)
    g1 = 1.0 + 0.1 * jax.random.normal(kg1, (C,), jnp.float32)
    b1 = 0.05 * jax.random.normal(kb1, (C,), jnp.float32)
    g2 = 1.0 + 0.1 * jax.random.normal(kg2, (C,), jnp.float32)
    b2 = 0.05 * jax.random.normal(kb2, (C,), jnp.float32)

    out = selected_resnet_block(x, filter_select, w1, w2, g1, b1, g2, b2)
    out = jax.block_until_ready(out)

    ref = jax.block_until_ready(_reference(x, filter_select, w1, w2, g1, b1, g2, b2))
    np.testing.assert_allclose(np.asarray(out), np.asarray(ref), rtol=5e-3, atol=2e-3)

    print("KERNEL_OK")
</pallas_src>

<mosaic_0001>
module attributes {stable_mosaic.version = 11 : i64} {
  func.func @_resblock_kernel(%arg0: i32, %arg1: memref<32x64xf32, #tpu.memory_space<vmem>>, %arg2: memref<3x64x64xf32, #tpu.memory_space<vmem>>, %arg3: memref<3x64x64xf32, #tpu.memory_space<vmem>>, %arg4: memref<3x32x32xf32, #tpu.memory_space<vmem>>, %arg5: memref<64x4xf32, #tpu.memory_space<vmem>>, %arg6: memref<4x64xf32, #tpu.memory_space<vmem>>, %arg7: memref<1x4xf32, #tpu.memory_space<vmem>>, %arg8: memref<1x4xf32, #tpu.memory_space<vmem>>, %arg9: memref<1x4xf32, #tpu.memory_space<vmem>>, %arg10: memref<1x4xf32, #tpu.memory_space<vmem>>, %arg11: memref<2x32x64xf32, #tpu.memory_space<vmem>>, %arg12: memref<32x64xf32, #tpu.memory_space<vmem>>) attributes {dimension_semantics = [#tpu.dimension_semantics<arbitrary>], iteration_bounds = array<i64: 1>, scalar_prefetch = 0 : i64, scratch_operands = 0 : i64, tpu.core_type = #tpu.core_type<tc>, window_params = [{pipeline_mode = #tpu.pipeline_mode<synchronous>, transform_indices = @transform_0, window_bounds = array<i64: 32, 64>}, {pipeline_mode = #tpu.pipeline_mode<synchronous>, transform_indices = @transform_1, window_bounds = array<i64: 3, 64, 64>}, {pipeline_mode = #tpu.pipeline_mode<synchronous>, transform_indices = @transform_2, window_bounds = array<i64: 3, 64, 64>}, {pipeline_mode = #tpu.pipeline_mode<synchronous>, transform_indices = @transform_3, window_bounds = array<i64: 3, 32, 32>}, {pipeline_mode = #tpu.pipeline_mode<synchronous>, transform_indices = @transform_4, window_bounds = array<i64: 64, 4>}, {pipeline_mode = #tpu.pipeline_mode<synchronous>, transform_indices = @transform_5, window_bounds = array<i64: 4, 64>}, {pipeline_mode = #tpu.pipeline_mode<synchronous>, transform_indices = @transform_6, window_bounds = array<i64: 1, 4>}, {pipeline_mode = #tpu.pipeline_mode<synchronous>, transform_indices = @transform_7, window_bounds = array<i64: 1, 4>}, {pipeline_mode = #tpu.pipeline_mode<synchronous>, transform_indices = @transform_8, window_bounds = array<i64: 1, 4>}, {pipeline_mode = #tpu.pipeline_mode<synchronous>, transform_indices = @transform_9, window_bounds = array<i64: 1, 4>}, {pipeline_mode = #tpu.pipeline_mode<synchronous>, transform_indices = @transform_10, window_bounds = array<i64: 2, 32, 64>}, {pipeline_mode = #tpu.pipeline_mode<synchronous>, transform_indices = @transform_11, window_bounds = array<i64: 32, 64>}]} {
    %c0 = arith.constant 0 : index
    %c0_0 = arith.constant 0 : index
    %0 = vector.load %arg1[%c0, %c0_0] : memref<32x64xf32, #tpu.memory_space<vmem>>, vector<32x64xf32>
    %c0_1 = arith.constant 0 : index
    %c0_2 = arith.constant 0 : index
    %1 = vector.load %arg5[%c0_1, %c0_2] : memref<64x4xf32, #tpu.memory_space<vmem>>, vector<64x4xf32>
    %c0_3 = arith.constant 0 : index
    %c0_4 = arith.constant 0 : index
    %2 = vector.load %arg6[%c0_3, %c0_4] : memref<4x64xf32, #tpu.memory_space<vmem>>, vector<4x64xf32>
    %cst = arith.constant 0.000000e+00 : f32
    %3 = vector.broadcast %cst : f32 to vector<32x64xf32>
    %c0_5 = arith.constant 0 : index
    %c0_6 = arith.constant 0 : index
    %c0_7 = arith.constant 0 : index
    %4 = vector.load %arg2[%c0_5, %c0_6, %c0_7] : memref<3x64x64xf32, #tpu.memory_space<vmem>>, vector<1x64x64xf32>
    %5 = vector.shape_cast %4 : vector<1x64x64xf32> to vector<64x64xf32>
    %cst_8 = arith.constant dense<0.000000e+00> : vector<32x64xf32>
    %6 = tpu.matmul %0, %5, %cst_8 {dimension_numbers = #tpu.dot_dimension_numbers<[1], [0], [0], [1], [0, 0, 1, 1], [], []>} : vector<32x64xf32>, vector<64x64xf32>, vector<32x64xf32> -> vector<32x64xf32>
    %c0_9 = arith.constant 0 : index
    %c0_10 = arith.constant 0 : index
    %c0_11 = arith.constant 0 : index
    %7 = vector.load %arg4[%c0_9, %c0_10, %c0_11] : memref<3x32x32xf32, #tpu.memory_space<vmem>>, vector<1x32x32xf32>
    %8 = vector.shape_cast %7 : vector<1x32x32xf32> to vector<32x32xf32>
    %cst_12 = arith.constant dense<0.000000e+00> : vector<32x64xf32>
    %9 = tpu.matmul %8, %6, %cst_12 {dimension_numbers = #tpu.dot_dimension_numbers<[1], [0], [0], [1], [0, 0, 1, 1], [], []>} : vector<32x32xf32>, vector<32x64xf32>, vector<32x64xf32> -> vector<32x64xf32>
    %10 = arith.addf %3, %9 : vector<32x64xf32>
    %c1 = arith.constant 1 : index
    %c0_13 = arith.constant 0 : index
    %c0_14 = arith.constant 0 : index
    %11 = vector.load %arg2[%c1, %c0_13, %c0_14] : memref<3x64x64xf32, #tpu.memory_space<vmem>>, vector<1x64x64xf32>
    %12 = vector.shape_cast %11 : vector<1x64x64xf32> to vector<64x64xf32>
    %cst_15 = arith.constant dense<0.000000e+00> : vector<32x64xf32>
    %13 = tpu.matmul %0, %12, %cst_15 {dimension_numbers = #tpu.dot_dimension_numbers<[1], [0], [0], [1], [0, 0, 1, 1], [], []>} : vector<32x64xf32>, vector<64x64xf32>, vector<32x64xf32> -> vector<32x64xf32>
    %c1_16 = arith.constant 1 : index
    %c0_17 = arith.constant 0 : index
    %c0_18 = arith.constant 0 : index
    %14 = vector.load %arg4[%c1_16, %c0_17, %c0_18] : memref<3x32x32xf32, #tpu.memory_space<vmem>>, vector<1x32x32xf32>
    %15 = vector.shape_cast %14 : vector<1x32x32xf32> to vector<32x32xf32>
    %cst_19 = arith.constant dense<0.000000e+00> : vector<32x64xf32>
    %16 = tpu.matmul %15, %13, %cst_19 {dimension_numbers = #tpu.dot_dimension_numbers<[1], [0], [0], [1], [0, 0, 1, 1], [], []>} : vector<32x32xf32>, vector<32x64xf32>, vector<32x64xf32> -> vector<32x64xf32>
    %17 = arith.addf %10, %16 : vector<32x64xf32>
    %c2 = arith.constant 2 : index
    %c0_20 = arith.constant 0 : index
    %c0_21 = arith.constant 0 : index
    %18 = vector.load %arg2[%c2, %c0_20, %c0_21] : memref<3x64x64xf32, #tpu.memory_space<vmem>>, vector<1x64x64xf32>
    %19 = vector.shape_cast %18 : vector<1x64x64xf32> to vector<64x64xf32>
    %cst_22 = arith.constant dense<0.000000e+00> : vector<32x64xf32>
    %20 = tpu.matmul %0, %19, %cst_22 {dimension_numbers = #tpu.dot_dimension_numbers<[1], [0], [0], [1], [0, 0, 1, 1], [], []>} : vector<32x64xf32>, vector<64x64xf32>, vector<32x64xf32> -> vector<32x64xf32>
    %c2_23 = arith.constant 2 : index
    %c0_24 = arith.constant 0 : index
    %c0_25 = arith.constant 0 : index
    %21 = vector.load %arg4[%c2_23, %c0_24, %c0_25] : memref<3x32x32xf32, #tpu.memory_space<vmem>>, vector<1x32x32xf32>
    %22 = vector.shape_cast %21 : vector<1x32x32xf32> to vector<32x32xf32>
    %cst_26 = arith.constant dense<0.000000e+00> : vector<32x64xf32>
    %23 = tpu.matmul %22, %20, %cst_26 {dimension_numbers = #tpu.dot_dimension_numbers<[1], [0], [0], [1], [0, 0, 1, 1], [], []>} : vector<32x32xf32>, vector<32x64xf32>, vector<32x64xf32> -> vector<32x64xf32>
    %24 = arith.addf %17, %23 : vector<32x64xf32>
    %c0_27 = arith.constant 0 : index
    %c0_28 = arith.constant 0 : index
    %25 = vector.load %arg7[%c0_27, %c0_28] : memref<1x4xf32, #tpu.memory_space<vmem>>, vector<1x4xf32>
    %c0_29 = arith.constant 0 : index
    %c0_30 = arith.constant 0 : index
    %26 = vector.load %arg8[%c0_29, %c0_30] : memref<1x4xf32, #tpu.memory_space<vmem>>, vector<1x4xf32>
    %cst_31 = arith.constant dense<0.000000e+00> : vector<64xf32>
    %27 = vector.multi_reduction <add>, %24, %cst_31 [0] : vector<32x64xf32> to vector<64xf32>
    %28 = vector.shape_cast %27 : vector<64xf32> to vector<1x64xf32>
    %cst_32 = arith.constant dense<0.000000e+00> : vector<1x4xf32>
    %29 = tpu.matmul %28, %1, %cst_32 {dimension_numbers = #tpu.dot_dimension_numbers<[1], [0], [0], [1], [0, 0, 1, 1], [], []>} : vector<1x64xf32>, vector<64x4xf32>, vector<1x4xf32> -> vector<1x4xf32>
    %cst_33 = arith.constant 0.001953125 : f32
    %30 = vector.broadcast %cst_33 : f32 to vector<1x4xf32>
    %31 = arith.mulf %29, %30 : vector<1x4xf32>
    %cst_34 = arith.constant dense<0.000000e+00> : vector<1x64xf32>
    %32 = tpu.matmul %31, %2, %cst_34 {dimension_numbers = #tpu.dot_dimension_numbers<[1], [0], [0], [1], [0, 0, 1, 1], [], []>} : vector<1x4xf32>, vector<4x64xf32>, vector<1x64xf32> -> vector<1x64xf32>
    %33 = vector.broadcast %32 : vector<1x64xf32> to vector<32x64xf32>
    %34 = arith.subf %24, %33 : vector<32x64xf32>
    %35 = arith.mulf %34, %34 : vector<32x64xf32>
    %cst_35 = arith.constant dense<0.000000e+00> : vector<64xf32>
    %36 = vector.multi_reduction <add>, %35, %cst_35 [0] : vector<32x64xf32> to vector<64xf32>
    %37 = vector.shape_cast %36 : vector<64xf32> to vector<1x64xf32>
    %cst_36 = arith.constant dense<0.000000e+00> : vector<1x4xf32>
    %38 = tpu.matmul %37, %1, %cst_36 {dimension_numbers = #tpu.dot_dimension_numbers<[1], [0], [0], [1], [0, 0, 1, 1], [], []>} : vector<1x64xf32>, vector<64x4xf32>, vector<1x4xf32> -> vector<1x4xf32>
    %cst_37 = arith.constant 0.001953125 : f32
    %39 = vector.broadcast %cst_37 : f32 to vector<1x4xf32>
    %40 = arith.mulf %38, %39 : vector<1x4xf32>
    %cst_38 = arith.constant 9.99999974E-6 : f32
    %41 = vector.broadcast %cst_38 : f32 to vector<1x4xf32>
    %42 = arith.addf %40, %41 : vector<1x4xf32>
    %43 = math.rsqrt %42 : vector<1x4xf32>
    %44 = arith.mulf %25, %43 : vector<1x4xf32>
    %cst_39 = arith.constant dense<0.000000e+00> : vector<1x64xf32>
    %45 = tpu.matmul %44, %2, %cst_39 {dimension_numbers = #tpu.dot_dimension_numbers<[1], [0], [0], [1], [0, 0, 1, 1], [], []>} : vector<1x4xf32>, vector<4x64xf32>, vector<1x64xf32> -> vector<1x64xf32>
    %46 = vector.broadcast %45 : vector<1x64xf32> to vector<32x64xf32>
    %47 = arith.mulf %34, %46 : vector<32x64xf32>
    %cst_40 = arith.constant dense<0.000000e+00> : vector<1x64xf32>
    %48 = tpu.matmul %26, %2, %cst_40 {dimension_numbers = #tpu.dot_dimension_numbers<[1], [0], [0], [1], [0, 0, 1, 1], [], []>} : vector<1x4xf32>, vector<4x64xf32>, vector<1x64xf32> -> vector<1x64xf32>
    %49 = vector.broadcast %48 : vector<1x64xf32> to vector<32x64xf32>
    %50 = arith.addf %47, %49 : vector<32x64xf32>
    %cst_41 = arith.constant 0.000000e+00 : f32
    %51 = vector.broadcast %cst_41 : f32 to vector<32x64xf32>
    %52 = arith.maximumf %50, %51 : vector<32x64xf32>
    %c0_42 = arith.constant 0 : index
    %c0_43 = arith.constant 0 : index
    %c0_44 = arith.constant 0 : index
    %53 = vector.load %arg11[%c0_42, %c0_43, %c0_44] : memref<2x32x64xf32, #tpu.memory_space<vmem>>, vector<1x32x64xf32>
    %54 = vector.shape_cast %53 : vector<1x32x64xf32> to vector<32x64xf32>
    %55 = arith.mulf %52, %54 : vector<32x64xf32>
    %cst_45 = arith.constant 0.000000e+00 : f32
    %56 = vector.broadcast %cst_45 : f32 to vector<32x64xf32>
    %c0_46 = arith.constant 0 : index
    %c0_47 = arith.constant 0 : index
    %c0_48 = arith.constant 0 : index
    %57 = vector.load %arg3[%c0_46, %c0_47, %c0_48] : memref<3x64x64xf32, #tpu.memory_space<vmem>>, vector<1x64x64xf32>
    %58 = vector.shape_cast %57 : vector<1x64x64xf32> to vector<64x64xf32>
    %cst_49 = arith.constant dense<0.000000e+00> : vector<32x64xf32>
    %59 = tpu.matmul %55, %58, %cst_49 {dimension_numbers = #tpu.dot_dimension_numbers<[1], [0], [0], [1], [0, 0, 1, 1], [], []>} : vector<32x64xf32>, vector<64x64xf32>, vector<32x64xf32> -> vector<32x64xf32>
    %c0_50 = arith.constant 0 : index
    %c0_51 = arith.constant 0 : index
    %c0_52 = arith.constant 0 : index
    %60 = vector.load %arg4[%c0_50, %c0_51, %c0_52] : memref<3x32x32xf32, #tpu.memory_space<vmem>>, vector<1x32x32xf32>
    %61 = vector.shape_cast %60 : vector<1x32x32xf32> to vector<32x32xf32>
    %cst_53 = arith.constant dense<0.000000e+00> : vector<32x64xf32>
    %62 = tpu.matmul %61, %59, %cst_53 {dimension_numbers = #tpu.dot_dimension_numbers<[1], [0], [0], [1], [0, 0, 1, 1], [], []>} : vector<32x32xf32>, vector<32x64xf32>, vector<32x64xf32> -> vector<32x64xf32>
    %63 = arith.addf %56, %62 : vector<32x64xf32>
    %c1_54 = arith.constant 1 : index
    %c0_55 = arith.constant 0 : index
    %c0_56 = arith.constant 0 : index
    %64 = vector.load %arg3[%c1_54, %c0_55, %c0_56] : memref<3x64x64xf32, #tpu.memory_space<vmem>>, vector<1x64x64xf32>
    %65 = vector.shape_cast %64 : vector<1x64x64xf32> to vector<64x64xf32>
    %cst_57 = arith.constant dense<0.000000e+00> : vector<32x64xf32>
    %66 = tpu.matmul %55, %65, %cst_57 {dimension_numbers = #tpu.dot_dimension_numbers<[1], [0], [0], [1], [0, 0, 1, 1], [], []>} : vector<32x64xf32>, vector<64x64xf32>, vector<32x64xf32> -> vector<32x64xf32>
    %c1_58 = arith.constant 1 : index
    %c0_59 = arith.constant 0 : index
    %c0_60 = arith.constant 0 : index
    %67 = vector.load %arg4[%c1_58, %c0_59, %c0_60] : memref<3x32x32xf32, #tpu.memory_space<vmem>>, vector<1x32x32xf32>
    %68 = vector.shape_cast %67 : vector<1x32x32xf32> to vector<32x32xf32>
    %cst_61 = arith.constant dense<0.000000e+00> : vector<32x64xf32>
    %69 = tpu.matmul %68, %66, %cst_61 {dimension_numbers = #tpu.dot_dimension_numbers<[1], [0], [0], [1], [0, 0, 1, 1], [], []>} : vector<32x32xf32>, vector<32x64xf32>, vector<32x64xf32> -> vector<32x64xf32>
    %70 = arith.addf %63, %69 : vector<32x64xf32>
    %c2_62 = arith.constant 2 : index
    %c0_63 = arith.constant 0 : index
    %c0_64 = arith.constant 0 : index
    %71 = vector.load %arg3[%c2_62, %c0_63, %c0_64] : memref<3x64x64xf32, #tpu.memory_space<vmem>>, vector<1x64x64xf32>
    %72 = vector.shape_cast %71 : vector<1x64x64xf32> to vector<64x64xf32>
    %cst_65 = arith.constant dense<0.000000e+00> : vector<32x64xf32>
    %73 = tpu.matmul %55, %72, %cst_65 {dimension_numbers = #tpu.dot_dimension_numbers<[1], [0], [0], [1], [0, 0, 1, 1], [], []>} : vector<32x64xf32>, vector<64x64xf32>, vector<32x64xf32> -> vector<32x64xf32>
    %c2_66 = arith.constant 2 : index
    %c0_67 = arith.constant 0 : index
    %c0_68 = arith.constant 0 : index
    %74 = vector.load %arg4[%c2_66, %c0_67, %c0_68] : memref<3x32x32xf32, #tpu.memory_space<vmem>>, vector<1x32x32xf32>
    %75 = vector.shape_cast %74 : vector<1x32x32xf32> to vector<32x32xf32>
    %cst_69 = arith.constant dense<0.000000e+00> : vector<32x64xf32>
    %76 = tpu.matmul %75, %73, %cst_69 {dimension_numbers = #tpu.dot_dimension_numbers<[1], [0], [0], [1], [0, 0, 1, 1], [], []>} : vector<32x32xf32>, vector<32x64xf32>, vector<32x64xf32> -> vector<32x64xf32>
    %77 = arith.addf %70, %76 : vector<32x64xf32>
    %c0_70 = arith.constant 0 : index
    %c0_71 = arith.constant 0 : index
    %78 = vector.load %arg9[%c0_70, %c0_71] : memref<1x4xf32, #tpu.memory_space<vmem>>, vector<1x4xf32>
    %c0_72 = arith.constant 0 : index
    %c0_73 = arith.constant 0 : index
    %79 = vector.load %arg10[%c0_72, %c0_73] : memref<1x4xf32, #tpu.memory_space<vmem>>, vector<1x4xf32>
    %cst_74 = arith.constant dense<0.000000e+00> : vector<64xf32>
    %80 = vector.multi_reduction <add>, %77, %cst_74 [0] : vector<32x64xf32> to vector<64xf32>
    %81 = vector.shape_cast %80 : vector<64xf32> to vector<1x64xf32>
    %cst_75 = arith.constant dense<0.000000e+00> : vector<1x4xf32>
    %82 = tpu.matmul %81, %1, %cst_75 {dimension_numbers = #tpu.dot_dimension_numbers<[1], [0], [0], [1], [0, 0, 1, 1], [], []>} : vector<1x64xf32>, vector<64x4xf32>, vector<1x4xf32> -> vector<1x4xf32>
    %cst_76 = arith.constant 0.001953125 : f32
    %83 = vector.broadcast %cst_76 : f32 to vector<1x4xf32>
    %84 = arith.mulf %82, %83 : vector<1x4xf32>
    %cst_77 = arith.constant dense<0.000000e+00> : vector<1x64xf32>
    %85 = tpu.matmul %84, %2, %cst_77 {dimension_numbers = #tpu.dot_dimension_numbers<[1], [0], [0], [1], [0, 0, 1, 1], [], []>} : vector<1x4xf32>, vector<4x64xf32>, vector<1x64xf32> -> vector<1x64xf32>
    %86 = vector.broadcast %85 : vector<1x64xf32> to vector<32x64xf32>
    %87 = arith.subf %77, %86 : vector<32x64xf32>
    %88 = arith.mulf %87, %87 : vector<32x64xf32>
    %cst_78 = arith.constant dense<0.000000e+00> : vector<64xf32>
    %89 = vector.multi_reduction <add>, %88, %cst_78 [0] : vector<32x64xf32> to vector<64xf32>
    %90 = vector.shape_cast %89 : vector<64xf32> to vector<1x64xf32>
    %cst_79 = arith.constant dense<0.000000e+00> : vector<1x4xf32>
    %91 = tpu.matmul %90, %1, %cst_79 {dimension_numbers = #tpu.dot_dimension_numbers<[1], [0], [0], [1], [0, 0, 1, 1], [], []>} : vector<1x64xf32>, vector<64x4xf32>, vector<1x4xf32> -> vector<1x4xf32>
    %cst_80 = arith.constant 0.001953125 : f32
    %92 = vector.broadcast %cst_80 : f32 to vector<1x4xf32>
    %93 = arith.mulf %91, %92 : vector<1x4xf32>
    %cst_81 = arith.constant 9.99999974E-6 : f32
    %94 = vector.broadcast %cst_81 : f32 to vector<1x4xf32>
    %95 = arith.addf %93, %94 : vector<1x4xf32>
    %96 = math.rsqrt %95 : vector<1x4xf32>
    %97 = arith.mulf %78, %96 : vector<1x4xf32>
    %cst_82 = arith.constant dense<0.000000e+00> : vector<1x64xf32>
    %98 = tpu.matmul %97, %2, %cst_82 {dimension_numbers = #tpu.dot_dimension_numbers<[1], [0], [0], [1], [0, 0, 1, 1], [], []>} : vector<1x4xf32>, vector<4x64xf32>, vector<1x64xf32> -> vector<1x64xf32>
    %99 = vector.broadcast %98 : vector<1x64xf32> to vector<32x64xf32>
    %100 = arith.mulf %87, %99 : vector<32x64xf32>
    %cst_83 = arith.constant dense<0.000000e+00> : vector<1x64xf32>
    %101 = tpu.matmul %79, %2, %cst_83 {dimension_numbers = #tpu.dot_dimension_numbers<[1], [0], [0], [1], [0, 0, 1, 1], [], []>} : vector<1x4xf32>, vector<4x64xf32>, vector<1x64xf32> -> vector<1x64xf32>
    %102 = vector.broadcast %101 : vector<1x64xf32> to vector<32x64xf32>
    %103 = arith.addf %100, %102 : vector<32x64xf32>
    %104 = arith.addf %103, %0 : vector<32x64xf32>
    %cst_84 = arith.constant 0.000000e+00 : f32
    %105 = vector.broadcast %cst_84 : f32 to vector<32x64xf32>
    %106 = arith.maximumf %104, %105 : vector<32x64xf32>
    %c1_85 = arith.constant 1 : index
    %c0_86 = arith.constant 0 : index
    %c0_87 = arith.constant 0 : index
    %107 = vector.load %arg11[%c1_85, %c0_86, %c0_87] : memref<2x32x64xf32, #tpu.memory_space<vmem>>, vector<1x32x64xf32>
    %108 = vector.shape_cast %107 : vector<1x32x64xf32> to vector<32x64xf32>
    %109 = arith.mulf %106, %108 : vector<32x64xf32>
    %c0_88 = arith.constant 0 : index
    %c0_89 = arith.constant 0 : index
    %110 = vector.load %arg12[%c0_88, %c0_89] : memref<32x64xf32, #tpu.memory_space<vmem>>, vector<32x64xf32>
    tpu.vector_store %arg12[%c0_88, %c0_89], %109 {strides = array<i32>} : memref<32x64xf32, #tpu.memory_space<vmem>>, vector<32x64xf32>,
    return
  }
  func.func @transform_0(%arg0: i32) -> (i32, i32) {
    %c0_i32 = arith.constant 0 : i32
    %c0_i32_0 = arith.constant 0 : i32
    %c0_i32_1 = arith.constant 0 : i32
    return %c0_i32, %c0_i32_0 : i32, i32
  }
  func.func @transform_1(%arg0: i32) -> (i32, i32, i32) {
    %c0_i32 = arith.constant 0 : i32
    %c0_i32_0 = arith.constant 0 : i32
    %c0_i32_1 = arith.constant 0 : i32
    %c0_i32_2 = arith.constant 0 : i32
    return %c0_i32, %c0_i32_0, %c0_i32_1 : i32, i32, i32
  }
  func.func @transform_2(%arg0: i32) -> (i32, i32, i32) {
    %c0_i32 = arith.constant 0 : i32
    %c0_i32_0 = arith.constant 0 : i32
    %c0_i32_1 = arith.constant 0 : i32
    %c0_i32_2 = arith.constant 0 : i32
    return %c0_i32, %c0_i32_0, %c0_i32_1 : i32, i32, i32
  }
  func.func @transform_3(%arg0: i32) -> (i32, i32, i32) {
    %c0_i32 = arith.constant 0 : i32
    %c0_i32_0 = arith.constant 0 : i32
    %c0_i32_1 = arith.constant 0 : i32
    %c0_i32_2 = arith.constant 0 : i32
    return %c0_i32, %c0_i32_0, %c0_i32_1 : i32, i32, i32
  }
  func.func @transform_4(%arg0: i32) -> (i32, i32) {
    %c0_i32 = arith.constant 0 : i32
    %c0_i32_0 = arith.constant 0 : i32
    %c0_i32_1 = arith.constant 0 : i32
    return %c0_i32, %c0_i32_0 : i32, i32
  }
  func.func @transform_5(%arg0: i32) -> (i32, i32) {
    %c0_i32 = arith.constant 0 : i32
    %c0_i32_0 = arith.constant 0 : i32
    %c0_i32_1 = arith.constant 0 : i32
    return %c0_i32, %c0_i32_0 : i32, i32
  }
  func.func @transform_6(%arg0: i32) -> (i32, i32) {
    %c0_i32 = arith.constant 0 : i32
    %c0_i32_0 = arith.constant 0 : i32
    %c0_i32_1 = arith.constant 0 : i32
    return %c0_i32, %c0_i32_0 : i32, i32
  }
  func.func @transform_7(%arg0: i32) -> (i32, i32) {
    %c0_i32 = arith.constant 0 : i32
    %c0_i32_0 = arith.constant 0 : i32
    %c0_i32_1 = arith.constant 0 : i32
    return %c0_i32, %c0_i32_0 : i32, i32
  }
  func.func @transform_8(%arg0: i32) -> (i32, i32) {
    %c0_i32 = arith.constant 0 : i32
    %c0_i32_0 = arith.constant 0 : i32
    %c0_i32_1 = arith.constant 0 : i32
    return %c0_i32, %c0_i32_0 : i32, i32
  }
  func.func @transform_9(%arg0: i32) -> (i32, i32) {
    %c0_i32 = arith.constant 0 : i32
    %c0_i32_0 = arith.constant 0 : i32
    %c0_i32_1 = arith.constant 0 : i32
    return %c0_i32, %c0_i32_0 : i32, i32
  }
  func.func @transform_10(%arg0: i32) -> (i32, i32, i32) {
    %c0_i32 = arith.constant 0 : i32
    %c0_i32_0 = arith.constant 0 : i32
    %c0_i32_1 = arith.constant 0 : i32
    %c0_i32_2 = arith.constant 0 : i32
    return %c0_i32, %c0_i32_0, %c0_i32_1 : i32, i32, i32
  }
  func.func @transform_11(%arg0: i32) -> (i32, i32) {
    %c0_i32 = arith.constant 0 : i32
    %c0_i32_0 = arith.constant 0 : i32
    %c0_i32_1 = arith.constant 0 : i32
    return %c0_i32, %c0_i32_0 : i32, i32
  }
}

</mosaic_0001>

<bundles_post_ra>
// kernel: selected_resnet_block.1
= control target key start
LH: loop header
LB: loop body
LE: loop exit
PB: predicated region body
PF: predicated region fallthrough
CT: control target
= control target key end

     0   :  { %vm59_vm0 = vcmask 523264   ;;  %vm260_vm1 = vcmask 261120   ;;  %vm2915_vm2 = vmmov 0   ;;  %vm748_vm3 = vcmask 1043456   ;;  %s3502_s1 = inlined_call_operand.vmem [shape: f32[3,64,64], index: 1, kind: input, shape index: {}]   ;;  %s3503_s0 = inlined_call_operand.vmem [shape: f32[32,64], index: 0, kind: input, shape index: {}]   ;;  %s3504_s3 = inlined_call_operand.vmem [shape: f32[3,32,32], index: 3, kind: input, shape index: {}]   ;;  %s3505_s4 = inlined_call_operand.vmem [shape: f32[64,4], index: 4, kind: input, shape index: {}]   ;;  %s3506_s5 = inlined_call_operand.vmem [shape: f32[4,64], index: 5, kind: input, shape index: {}]   ;;  %s3507_s2 = inlined_call_operand.vmem [shape: f32[3,64,64], index: 2, kind: input, shape index: {}]   ;;  %s3508_s6 = inlined_call_operand.vmem [shape: f32[1,4], index: 6, kind: input, shape index: {}]   ;;  %s3509_s7 = inlined_call_operand.vmem [shape: f32[1,4], index: 7, kind: input, shape index: {}]   ;;  %s3510_s10 = inlined_call_operand.vmem [shape: f32[2,32,64], index: 10, kind: input, shape index: {}]   ;;  %s3511_s8 = inlined_call_operand.vmem [shape: f32[1,4], index: 8, kind: input, shape index: {}]   ;;  %s3512_s9 = inlined_call_operand.vmem [shape: f32[1,4], index: 9, kind: input, shape index: {}]   ;;  %s3513_s11 = inlined_call_operand.vmem [shape: f32[32,64], index: 11, kind: output, shape index: {}]  }
   0x1   :  { %v2105_v0 = vld [vmem:[%s3502_s1 + $0x40] sm:$0xff]  ;;  %v2106_v1 = vld [vmem:[%s3502_s1 + $0x48] sm:$0xff]  ;;  %v2107_v2 = vld [vmem:[%s3502_s1 + $0x50] sm:$0xff]  ;;  %vm744_vm4 = vcmask 31744  }
   0x2   :  { %v2715_v3 = vpack.c.bf16 %v2106_v1, %v2105_v0  ;;  %v2108_v4 = vld [vmem:[%s3502_s1 + $0x58] sm:$0xff]  ;;  %v51_v5 = vld [vmem:[%s3502_s1] sm:$0xff]  ;;  %v52_v6 = vld [vmem:[%s3502_s1 + $0x8] sm:$0xff] }
   0x3   :  { %v2719_v7 = vpack.c.bf16 %v2108_v4, %v2107_v2  ;;  %v2699_v8 = vpack.c.bf16 %v52_v6, %v51_v5  ;;  %v2109_v9 = vld [vmem:[%s3502_s1 + $0x60] sm:$0xff]  ;;  %v2110_v10 = vld [vmem:[%s3502_s1 + $0x68] sm:$0xff]  ;;  %v53_v11 = vld [vmem:[%s3502_s1 + $0x10] sm:$0xff] }
   0x4   :  { %2716 = vmatprep.subr.bf16.mxu1 %v2715_v3  ;;  %v54_v12 = vld [vmem:[%s3502_s1 + $0x18] sm:$0xff]  ;;  %v55_v14 = vld [vmem:[%s3502_s1 + $0x20] sm:$0xff]  ;;  %v56_v15 = vld [vmem:[%s3502_s1 + $0x28] sm:$0xff]  ;;  %v2723_v17 = vpack.c.bf16 %v2110_v10, %v2109_v9  ;;  %v2914_v9 = vmov 0.0|0.0  }
   0x5   :  { %2718 = vmatpush3.bf16.msra.mxu1 %v2715_v3  ;;  %2700 = vmatprep.subr.bf16.mxu0 %v2699_v8  ;;  %v2703_v13 = vpack.c.bf16 %v54_v12, %v53_v11  ;;  %v3016_v16 = vld [vmem:[%s3503_s0] sm:$0xff]  ;;  %v2111_v18 = vld [vmem:[%s3502_s1 + $0x70] sm:$0xff]  ;;  %v2112_v19 = vld [vmem:[%s3502_s1 + $0x78] sm:$0xff]  ;;  %v2707_v20 = vpack.c.bf16 %v56_v15, %v55_v14 }
   0x6   :  { %2720 = vmatprep.subr.bf16.mxu1 %v2719_v7  ;;  %2702 = vmatpush3.bf16.msra.mxu0 %v2699_v8  ;;  %v57_v21 = vld [vmem:[%s3502_s1 + $0x30] sm:$0xff]  ;;  %v58_v22 = vld [vmem:[%s3502_s1 + $0x38] sm:$0xff]  ;;  %v2727_v23 = vpack.c.bf16 %v2112_v19, %v2111_v18  ;;  %v2129_v24 = vld [vmem:[%s3502_s1 + $0x80] sm:$0xff] }
   0x7   :  { %2704 = vmatprep.subr.bf16.mxu0 %v2703_v13  ;;  %2415 = vmatprep.mubr.msk.f32.mxu1 %vm59_vm0, %v3016_v16  ;;  %v2130_v25 = vld [vmem:[%s3502_s1 + $0x88] sm:$0xff]  ;;  %v2711_v26 = vpack.c.bf16 %v58_v22, %v57_v21  ;;  %v2131_v28 = vld [vmem:[%s3502_s1 + $0x90] sm:$0xff]  ;;  %v2132_v29 = vld [vmem:[%s3502_s1 + $0x98] sm:$0xff] }
   0x8   :  { %2393 = vmatprep.mubr.msk.f32.mxu0 %vm59_vm0, %v3016_v16  ;;  %v2747_v27 = vpack.c.bf16 %v2130_v25, %v2129_v24  ;;  %v3049_v30 = vld [vmem:[%s3503_s0 + $0x8] sm:$0xff]  ;;  %v3054_v31 = vld [vmem:[%s3503_s0 + $0x10] sm:$0xff]  ;;  %v2751_v32 = vpack.c.bf16 %v2132_v29, %v2131_v28  ;;  %v2133_v33 = vld [vmem:[%s3502_s1 + $0xa0] sm:$0xff] }
   0x9   :  { %2722 = vmatpush3.bf16.msra.mxu1 %v2719_v7  ;;  %v2134_v34 = vld [vmem:[%s3502_s1 + $0xa8] sm:$0xff]  ;;  %v3069_v35 = vld [vmem:[%s3503_s0 + $0x18] sm:$0xff]  ;;  %v2135_v37 = vld [vmem:[%s3502_s1 + $0xb0] sm:$0xff] }
   0xa   :  { %2724 = vmatprep.subr.bf16.mxu1 %v2723_v17  ;;  %2706 = vmatpush3.bf16.msra.mxu0 %v2703_v13  ;;  %v2755_v36 = vpack.c.bf16 %v2134_v34, %v2133_v33  ;;  %v2136_v38 = vld [vmem:[%s3502_s1 + $0xb8] sm:$0xff]  ;;  %v3096_v40 = vld [vmem:[%s3504_s3 + $0x20] sm:$0xff]  ;;  %v3103_v53 = vld [vmem:[%s3504_s3 + $0x28] sm:$0xff] }
   0xb   :  { %2708 = vmatprep.subr.bf16.mxu0 %v2707_v20  ;;  %v2759_v39 = vpack.c.bf16 %v2136_v38, %v2135_v37  ;;  %v3108_v54 = vld [vmem:[%s3504_s3 + $0x30] sm:$0xff]  ;;  %v3117_v55 = vld [vmem:[%s3504_s3 + $0x38] sm:$0xff]  ;;  %v3122_v56 = vld [vmem:[%s3504_s3] sm:$0xff] }
   0xc   :  { %v3131_v59 = vld [vmem:[%s3504_s3 + $0x8] sm:$0xff]  ;;  %v3136_v61 = vld [vmem:[%s3504_s3 + $0x10] sm:$0xff]  ;;  %v3145_v0 = vld [vmem:[%s3504_s3 + $0x18] sm:$0xff] }
   0xd   :  { %2726 = vmatpush3.bf16.msra.mxu1 %v2723_v17  ;;  %v3150_v2 = vld [vmem:[%s3504_s3 + $0x40] sm:$0xff]  ;;  %v3159_v3 = vld [vmem:[%s3504_s3 + $0x48] sm:$0xff]  ;;  %v3164_v4 = vld [vmem:[%s3504_s3 + $0x50] sm:$0xff] }
   0xe   :  { %2728 = vmatprep.subr.bf16.mxu1 %v2727_v23  ;;  %2710 = vmatpush3.bf16.msra.mxu0 %v2707_v20  ;;  %v3173_v5 = vld [vmem:[%s3504_s3 + $0x58] sm:$0xff]  ;;  %v42_v6 = vld [vmem:[%s3505_s4] sm:$0xff]  ;;  %v43_v7 = vld [vmem:[%s3505_s4 + $0x8] sm:$0xff]  ;;  %v2916_v20 = vmov 0.0  }
   0xf   :  { %2712 = vmatprep.subr.bf16.mxu0 %v2711_v26  ;;  %v3183_v8 = vpack.c.bf16 %v43_v7, %v42_v6  ;;  %v44_v10 = vld [vmem:[%s3505_s4 + $0x10] sm:$0xff]  ;;  %v45_v11 = vld [vmem:[%s3505_s4 + $0x18] sm:$0xff]  ;;  %v46_v13 = vld [vmem:[%s3505_s4 + $0x20] sm:$0xff] }
  0x10   :  { %v3194_v12 = vpack.c.bf16 %v45_v11, %v44_v10  ;;  %v47_v14 = vld [vmem:[%s3505_s4 + $0x28] sm:$0xff]  ;;  %v48_v17 = vld [vmem:[%s3505_s4 + $0x30] sm:$0xff]  ;;  %v49_v18 = vld [vmem:[%s3505_s4 + $0x38] sm:$0xff] }
  0x11   :  { %2730 = vmatpush3.bf16.msra.mxu1 %v2727_v23  ;;  %v3204_v15 = vpack.c.bf16 %v47_v14, %v46_v13  ;;  %v3214_v19 = vpack.c.bf16 %v49_v18, %v48_v17  ;;  %v3226_v21 = vld [vmem:[%s3506_s5] sm:$0xf] }
  0x12   :  { %2748 = vmatprep.subr.bf16.mxu1 %v2747_v27  ;;  %2714 = vmatpush3.bf16.msra.mxu0 %v2711_v26 }
  0x14   :  { %2416 = vmatmul.mubr.msk.f32.vlgmr.msra.gmra.mrb[0].mxu1 %vm59_vm0, %v3049_v30 }
  0x15   :  { %2750 = vmatpush3.bf16.msra.mxu1 %v2747_v27  ;;  %2418 = vmatprep.mubr.msk.f32.mxu1 %vm59_vm0, %v3054_v31 }
  0x16   :  { %2752 = vmatprep.subr.bf16.mxu1 %v2751_v32  ;;  %2394 = vmatmul.mubr.msk.f32.vlgmr.msra.gmra.mrb[0].mxu0 %vm59_vm0, %v3049_v30 }
  0x17   :  { %2396 = vmatprep.mubr.msk.f32.mxu0 %vm59_vm0, %v3054_v31 }
  0x18   :  { %2419 = vmatmul.mubr.msk.f32.gmra.mrb[2].mxu1 %vm59_vm0, %v3069_v35 }
  0x19   :  { %2754 = vmatpush3.bf16.msra.mxu1 %v2751_v32  ;;  %2465 = vmatprep.mubr.msk.f32.mxu1 %vm59_vm0, %v3016_v16 }
  0x1a   :  { %2756 = vmatprep.subr.bf16.mxu1 %v2755_v36  ;;  %2397 = vmatmul.mubr.msk.f32.gmra.mrb[2].mxu0 %vm59_vm0, %v3069_v35 }
  0x1b   :  { %2429 = vmatprep.mubr.msk.f32.mxu0 %vm260_vm1, %v3096_v40 }
  0x1d   :  { %2758 = vmatpush3.bf16.msra.mxu1 %v2755_v36 }
  0x1e   :  { %2760 = vmatprep.subr.bf16.mxu1 %v2759_v39 }
  0x21   :  { %2762 = vmatpush3.bf16.msra.mxu1 %v2759_v39 }
  0x22   :  { %2771 = vmatprep.subr.bf16.mxu1 %v2914_v9 }
  0x24   :  { %2466 = vmatmul.mubr.msk.f32.vlgmr.msra.gmra.mrb[4].mxu1 %vm59_vm0, %v3049_v30 }
  0x25   :  { %2468 = vmatprep.mubr.msk.f32.mxu1 %vm59_vm0, %v3054_v31  ;;  %2773 = vmatpush3.bf16.msra.mxu1 %v3183_v8 }
  0x26   :  { %2774 = vmatprep.subr.bf16.mxu1 %v2914_v9 }
  0x28   :  { %2469 = vmatmul.mubr.msk.f32.gmra.mrb[6].mxu1 %vm59_vm0, %v3069_v35 }
  0x29   :  { %2776 = vmatpush3.bf16.msra.mxu1 %v3194_v12  ;;  %2501 = vmatprep.mubr.msk.f32.mxu1 %vm2915_vm2, %v2916_v20 }
  0x2a   :  { %2777 = vmatprep.subr.bf16.mxu1 %v2914_v9 }
  0x2d   :  { %2779 = vmatpush3.bf16.msra.mxu1 %v3204_v15 }
  0x2e   :  { %2780 = vmatprep.subr.bf16.mxu1 %v2914_v9 }
  0x31   :  { %2782 = vmatpush3.bf16.msra.mxu1 %v3214_v19 }
  0x32   :  { %2528 = vmatprep.subr.mxu1 %v2916_v20 }
  0xe7   :  { %v2417_v41 = vpop.f32.mrb[0].mxu1 }
  0xe8   :  { %v236_v42 = vpop.f32.mrb[1].mxu1 }
  0xe9   :  { %v2731_v43 = vpack.c.bf16 %v2417_v41, %v236_v42  ;;  %v2395_v44 = vpop.f32.mrb[0].mxu0 }
  0xea   :  { %v138_v45 = vpop.f32.mrb[1].mxu0 }
  0xeb   :  { %v2420_v46 = vpop.f32.mrb[2].mxu1  ;;  %2732 = vmatprep.subr.bf16.mxu0 %v2731_v43  ;;  %v2739_v47 = vpack.c.bf16 %v2395_v44, %v138_v45 }
  0xec   :  { %v246_v48 = vpop.f32.mrb[3].mxu1  ;;  %2734 = vmatpush3.bf16.msra.mxu0 %v2731_v43 }
  0xed   :  { %v2735_v49 = vpack.c.bf16 %v2420_v46, %v246_v48  ;;  %v2398_v50 = vpop.f32.mrb[2].mxu0  ;;  %v822_v46 = vlaneseq }
  0xee   :  { %v148_v51 = vpop.f32.mrb[3].mxu0 }
  0xef   :  { %2736 = vmatprep.subr.bf16.mxu0 %v2735_v49  ;;  %v2743_v52 = vpack.c.bf16 %v2398_v50, %v148_v51 }
  0xf0   :  { %2738 = vmatpush3.bf16.msra.mxu0 %v2735_v49 }
  0xf1   :  { %2740 = vmatprep.subr.bf16.mxu0 %v2739_v47 }
  0xf3   :  { %2430 = vmatmul.mubr.msk.f32.vlgmr.msra.gmra.mrb[4].mxu0 %vm260_vm1, %v3103_v53 }
  0xf4   :  { %2742 = vmatpush3.bf16.msra.mxu0 %v2739_v47  ;;  %2432 = vmatprep.mubr.msk.f32.mxu0 %vm260_vm1, %v3108_v54  ;;  %v823_v47 = vshrl.u32 %v822_v46, 7  ;;  %v2163_v46 = vld [vmem:[%s3507_s2 + $0x50] sm:$0xff] }
  0xf5   :  { %2744 = vmatprep.subr.bf16.mxu0 %v2743_v52 }
  0xf6   :  { %v3251_v48 = vsub.s32 0, %v823_v47  ;;  %v2164_v47 = vld [vmem:[%s3507_s2 + $0x58] sm:$0xff] }
  0xf7   :  { %2433 = vmatmul.mubr.msk.f32.gmra.mrb[6].mxu0 %vm260_vm1, %v3117_v55  ;;  %v2467_v57 = vpop.f32.mrb[4].mxu1 }
  0xf8   :  { %2746 = vmatpush3.bf16.msra.mxu0 %v2743_v52  ;;  %v530_v58 = vpop.f32.mrb[5].mxu1  ;;  %2443 = vmatprep.mubr.msk.f32.mxu0 %vm260_vm1, %v3122_v56 }
  0xf9   :  { %v2763_v60 = vpack.c.bf16 %v2467_v57, %v530_v58 }
  0xfb   :  { %2444 = vmatmul.mubr.msk.f32.vlgmr.msra.gmra.mrb[4].mxu0 %vm260_vm1, %v3131_v59  ;;  %v2470_v62 = vpop.f32.mrb[6].mxu1  ;;  %2764 = vmatprep.subr.bf16.mxu0 %v2763_v60 }
  0xfc   :  { %v540_v63 = vpop.f32.mrb[7].mxu1  ;;  %2766 = vmatpush3.bf16.msra.mxu0 %v2763_v60  ;;  %2446 = vmatprep.mubr.msk.f32.mxu0 %vm260_vm1, %v3136_v61 }
  0xfd   :  { %v2767_v1 = vpack.c.bf16 %v2470_v62, %v540_v63 }
  0xff   :  { %2447 = vmatmul.mubr.msk.f32.gmra.mrb[6].mxu0 %vm260_vm1, %v3145_v0  ;;  %2768 = vmatprep.subr.bf16.mxu0 %v2767_v1 }
 0x100   :  { %2770 = vmatpush3.bf16.msra.mxu0 %v2767_v1  ;;  %2479 = vmatprep.mubr.msk.f32.mxu0 %vm260_vm1, %v3150_v2 }
 0x101   :  { %2504 = vmatprep.subr.mxu0 %v2916_v20 }
 0x103   :  { %2480 = vmatmul.mubr.msk.f32.vlgmr.msra.gmra.mrb[4].mxu0 %vm260_vm1, %v3159_v3 }
 0x104   :  { %2482 = vmatprep.mubr.msk.f32.mxu0 %vm260_vm1, %v3164_v4  ;;  %2505 = vmatpush3.msk.msra.mxu0 %vm748_vm3, %v3226_v21 }
 0x105   :  { %2783 = vmatprep.subr.bf16.mxu0 %v2914_v9 }
 0x107   :  { %2483 = vmatmul.mubr.msk.f32.gmra.mrb[6].mxu0 %vm260_vm1, %v3173_v5 }
 0x108   :  { %2506 = vmatprep.mubr.msk.f32.mxu0 %vm2915_vm2, %v2916_v20 }
 0x1d6   :  { %v2481_v22 = vpop.f32.mrb[4].mxu0 }
 0x1d7   :  { %v658_v23 = vsel %vm59_vm0, %v2481_v22, 0.0  ;;  %v632_v24 = vpop.f32.mrb[5].mxu0 }
 0x1d8   :  { %v657_v25 = vsel %vm59_vm0, %v632_v24, 0.0 }
 0x1d9   :  { %v659_v26 = vadd.f32 %v658_v23, %v657_v25 }
 0x1da   :  { %v2484_v27 = vpop.f32.mrb[6].mxu0 }
 0x1db   :  { %v642_v28 = vpop.f32.mrb[7].mxu0  ;;  %v662_v33 = vsel %vm59_vm0, %v2484_v27, 0.0 }
 0x1dc   :  { %v660_v29 = vsel %vm59_vm0, %v642_v28, 0.0 }
 0x1dd   :  { %v661_v32 = vadd.f32 %v660_v29, %v659_v26  ;;  %v2162_v29 = vld [vmem:[%s3507_s2 + $0x48] sm:$0xff] }
 0x1df   :  { %v663_v34 = vadd.f32 %v662_v33, %v661_v32 }
 0x1e1   :  { %v664_v36 = vrot.slane %v663_v34, 4 }
 0x1e3   :  { %v665_v37 = vadd.f32 %v664_v36, %v663_v34 }
 0x1e5   :  { %v666_v38 = vrot.slane %v665_v37, 2 }
 0x1e7   :  { %v667_v39 = vadd.f32 %v666_v38, %v665_v37  ;;  %v655_v38 = vld [vmem:[%s3508_s6] sm:$0x1] }
 0x1e9   :  { %v668_v41 = vrot.slane %v667_v39, 1 }
 0x1eb   :  { %v669_v42 = vadd.f32 %v668_v41, %v667_v39  ;;  %v1098_v39 = vld [vmem:[%s3507_s2] sm:$0xff]  ;;  %v1099_v41 = vld [vmem:[%s3507_s2 + $0x8] sm:$0xff] }
 0x1ed   :  { %2502 = vmatmul.mubr.msk.f32.vlgmr.msra.gmra.mrb[8].mxu1 %vm59_vm0, %v669_v42 }
 0x1ee   :  { %2529 = vmatpush3.msk.msra.mxu1 %vm748_vm3, %v3226_v21  ;;  %2530 = vmatprep.mubr.msk.f32.mxu1 %vm2915_vm2, %v2916_v20 }
 0x1ef   :  { %2533 = vmatprep.subr.mxu1 %v2916_v20 }
 0x2c0   :  { %v739_v43 = vpop.f32.mrb[8].mxu1 }
 0x2c1   :  { %v743_v44 = vmul.f32 0.001953125, %v739_v43  ;;  %v2503_v45 = vpop.f32.mrb[9].mxu1 }
 0x2c2   :  { %v656_v45 = vld [vmem:[%s3509_s7] sm:$0x1] }
 0x2c3   :  { %2507 = vmatmul.mubr.msk.f32.vlgmr.msra.gmra.mrb[8].mxu0 %vm744_vm4, %v743_v44  ;;  %v2795_v44 = vpack.c.bf16 %v1099_v41, %v1098_v39 }
 0x2c4   :  { %2785 = vmatpush3.bf16.msra.mxu0 %v3183_v8  ;;  %2525 = vmatprep.mubr.msk.f32.mxu0 %vm2915_vm2, %v2916_v20 }
 0x2c5   :  { %2786 = vmatprep.subr.bf16.mxu0 %v2914_v9 }
 0x2c8   :  { %2788 = vmatpush3.bf16.msra.mxu0 %v3194_v12 }
 0x2c9   :  { %2789 = vmatprep.subr.bf16.mxu0 %v2914_v9 }
 0x2cc   :  { %2791 = vmatpush3.bf16.msra.mxu0 %v3204_v15 }
 0x2cd   :  { %2792 = vmatprep.subr.bf16.mxu0 %v2914_v9 }
 0x2d0   :  { %2794 = vmatpush3.bf16.msra.mxu0 %v3214_v19 }
 0x396   :  { %v818_v49 = vpop.f32.mrb[8].mxu0 }
 0x397   :  { %v825_v50 = vrot.slane %v818_v49, %v3251_v48  ;;  %v2508_v51 = vpop.f32.mrb[9].mxu0  ;;  %v2815_v49 = vpack.c.bf16 %v2164_v47, %v2163_v46  ;;  %v2184_v47 = vld [vmem:[%s3507_s2 + $0x98] sm:$0xff] }
 0x398   :  { %v1101_v51 = vld [vmem:[%s3507_s2 + $0x18] sm:$0xff] }
 0x399   :  { %v3254_v52 = vsub.f32 %v632_v24, %v825_v50  ;;  %v3256_v57 = vsub.f32 %v2481_v22, %v825_v50  ;;  %v3258_v58 = vsub.f32 %v642_v28, %v825_v50  ;;  %v3260_v60 = vsub.f32 %v2484_v27, %v825_v50  ;;  %v2161_v28 = vld [vmem:[%s3507_s2 + $0x40] sm:$0xff]  ;;  %v1100_v50 = vld [vmem:[%s3507_s2 + $0x10] sm:$0xff] }
 0x39a   :  { %v2811_v32 = vpack.c.bf16 %v2162_v29, %v2161_v28 }
 0x39b   :  { %v830_v62 = vmul.f32 %v3254_v52, %v3254_v52  ;;  %v831_v63 = vmul.f32 %v3256_v57, %v3256_v57  ;;  %v832_v1 = vmul.f32 %v3258_v58, %v3258_v58  ;;  %v833_v6 = vmul.f32 %v3260_v60, %v3260_v60 }
 0x39c   :  { %2812 = vmatprep.subr.bf16.mxu0 %v2811_v32 }
 0x39d   :  { %v834_v7 = vsel %vm59_vm0, %v830_v62, 0.0  ;;  %v835_v10 = vsel %vm59_vm0, %v831_v63, 0.0  ;;  %v837_v13 = vsel %vm59_vm0, %v832_v1, 0.0  ;;  %v839_v17 = vsel %vm59_vm0, %v833_v6, 0.0  ;;  %v2165_v63 = vld [vmem:[%s3507_s2 + $0x60] sm:$0xff]  ;;  %v2166_v1 = vld [vmem:[%s3507_s2 + $0x68] sm:$0xff] }
 0x39e   :  { %v836_v11 = vadd.f32 %v835_v10, %v834_v7  ;;  %v2799_v62 = vpack.c.bf16 %v1101_v51, %v1100_v50  ;;  %v2819_v6 = vpack.c.bf16 %v2166_v1, %v2165_v63  ;;  %v1102_v7 = vld [vmem:[%s3507_s2 + $0x20] sm:$0xff]  ;;  %v1103_v10 = vld [vmem:[%s3507_s2 + $0x28] sm:$0xff] }
 0x3a0   :  { %v838_v14 = vadd.f32 %v837_v13, %v836_v11  ;;  %v2803_v11 = vpack.c.bf16 %v1103_v10, %v1102_v7  ;;  %v2167_v13 = vld [vmem:[%s3507_s2 + $0x70] sm:$0xff]  ;;  %v2185_v7 = vld [vmem:[%s3507_s2 + $0xa0] sm:$0xff]  ;;  %v2186_v10 = vld [vmem:[%s3507_s2 + $0xa8] sm:$0xff] }
 0x3a2   :  { %v840_v18 = vadd.f32 %v839_v17, %v838_v14  ;;  %v2168_v14 = vld [vmem:[%s3507_s2 + $0x78] sm:$0xff] }
 0x3a3   :  { %v2823_v17 = vpack.c.bf16 %v2168_v14, %v2167_v13  ;;  %v2851_v13 = vpack.c.bf16 %v2186_v10, %v2185_v7  ;;  %v2187_v14 = vld [vmem:[%s3507_s2 + $0xb0] sm:$0xff] }
 0x3a4   :  { %v841_v22 = vrot.slane %v840_v18, 4 }
 0x3a6   :  { %v842_v23 = vadd.f32 %v841_v22, %v840_v18  ;;  %v1104_v18 = vld [vmem:[%s3507_s2 + $0x30] sm:$0xff]  ;;  %v1105_v22 = vld [vmem:[%s3507_s2 + $0x38] sm:$0xff] }
 0x3a8   :  { %v843_v24 = vrot.slane %v842_v23, 2 }
 0x3aa   :  { %v844_v25 = vadd.f32 %v843_v24, %v842_v23  ;;  %v2807_v23 = vpack.c.bf16 %v1105_v22, %v1104_v18  ;;  %v2181_v24 = vld [vmem:[%s3507_s2 + $0x80] sm:$0xff] }
 0x3ac   :  { %v845_v26 = vrot.slane %v844_v25, 1 }
 0x3ae   :  { %v846_v27 = vadd.f32 %v845_v26, %v844_v25  ;;  %v2182_v25 = vld [vmem:[%s3507_s2 + $0x88] sm:$0xff] }
 0x3af   :  { %v2843_v26 = vpack.c.bf16 %v2182_v25, %v2181_v24 }
 0x3b0   :  { %2526 = vmatmul.mubr.msk.f32.vlgmr.msra.gmra.mrb[10].mxu0 %vm59_vm0, %v846_v27 }
 0x3b1   :  { %2814 = vmatpush3.bf16.msra.mxu0 %v2811_v32 }
 0x3b2   :  { %2816 = vmatprep.subr.bf16.mxu0 %v2815_v49 }
 0x3b5   :  { %2818 = vmatpush3.bf16.msra.mxu0 %v2815_v49  ;;  %v1092_v49 = vld [vmem:[%s3510_s10 + $0x10] sm:$0xff] }
 0x3b6   :  { %2820 = vmatprep.subr.bf16.mxu0 %v2819_v6 }
 0x3b9   :  { %2822 = vmatpush3.bf16.msra.mxu0 %v2819_v6  ;;  %v1093_v6 = vld [vmem:[%s3510_s10 + $0x18] sm:$0xff] }
 0x3ba   :  { %2824 = vmatprep.subr.bf16.mxu0 %v2823_v17 }
 0x3bd   :  { %2826 = vmatpush3.bf16.msra.mxu0 %v2823_v17  ;;  %v2188_v17 = vld [vmem:[%s3507_s2 + $0xb8] sm:$0xff] }
 0x3be   :  { %2844 = vmatprep.subr.bf16.mxu0 %v2843_v26  ;;  %v2855_v18 = vpack.c.bf16 %v2188_v17, %v2187_v14 }
 0x483   :  { %v916_v33 = vpop.f32.mrb[10].mxu0 }
 0x484   :  { %v920_v34 = vmul.f32 0.001953125, %v916_v33  ;;  %v2527_v36 = vpop.f32.mrb[11].mxu0 }
 0x486   :  { %v921_v37 = vadd.f32 1e-05, %v920_v34 }
 0x488   :  { %2910 = vrsqrt.f32 %v921_v37 }
 0x492   :  { %v2911_v42 = vpop.eup %2910 }
 0x493   :  { %v923_v43 = vmul.f32 %v2911_v42, %v655_v38 }
 0x495   :  { %2531 = vmatmul.mubr.msk.f32.vlgmr.msra.gmra.mrb[10].mxu1 %vm744_vm4, %v923_v43 }
 0x496   :  { %2534 = vmatpush3.msk.msra.mxu1 %vm748_vm3, %v3226_v21  ;;  %2535 = vmatprep.mubr.msk.f32.mxu1 %vm2915_vm2, %v2916_v20 }
 0x497   :  { %2796 = vmatprep.subr.bf16.mxu1 %v2795_v44 }
 0x499   :  { %2536 = vmatmul.mubr.msk.f32.vlgmr.msra.gmra.mrb[12].mxu1 %vm744_vm4, %v656_v45  ;;  %v1091_v45 = vld [vmem:[%s3510_s10 + $0x8] sm:$0xff] }
 0x49a   :  { %2798 = vmatpush3.bf16.msra.mxu1 %v2795_v44 }
 0x49b   :  { %2800 = vmatprep.subr.bf16.mxu1 %v2799_v62 }
 0x49e   :  { %2802 = vmatpush3.bf16.msra.mxu1 %v2799_v62 }
 0x49f   :  { %2804 = vmatprep.subr.bf16.mxu1 %v2803_v11 }
 0x4a2   :  { %2806 = vmatpush3.bf16.msra.mxu1 %v2803_v11 }
 0x4a3   :  { %2808 = vmatprep.subr.bf16.mxu1 %v2807_v23 }
 0x4a6   :  { %2810 = vmatpush3.bf16.msra.mxu1 %v2807_v23 }
 0x568   :  { %v993_v27 = vpop.f32.mrb[10].mxu1 }
 0x569   :  { %v1000_v28 = vrot.slane %v993_v27, %v3251_v48  ;;  %v2532_v29 = vpop.f32.mrb[11].mxu1 }
 0x56b   :  { %v1001_v32 = vmul.f32 %v1000_v28, %v3254_v52  ;;  %v1002_v34 = vmul.f32 %v1000_v28, %v3256_v57  ;;  %v1003_v36 = vmul.f32 %v1000_v28, %v3258_v58  ;;  %v1004_v37 = vmul.f32 %v1000_v28, %v3260_v60  ;;  %v1090_v52 = vld [vmem:[%s3510_s10] sm:$0xff]  ;;  %v2183_v60 = vld [vmem:[%s3507_s2 + $0x90] sm:$0xff] }
 0x56c   :  { %v1074_v33 = vpop.f32.mrb[12].mxu1  ;;  %v2847_v63 = vpack.c.bf16 %v2184_v47, %v2183_v60 }
 0x56d   :  { %v1081_v38 = vrot.slane %v1074_v33, %v3251_v48  ;;  %v2537_v39 = vpop.f32.mrb[13].mxu1 }
 0x56f   :  { %v1082_v41 = vadd.f32 %v1081_v38, %v1001_v32  ;;  %v1083_v42 = vadd.f32 %v1081_v38, %v1002_v34  ;;  %v1084_v43 = vadd.f32 %v1081_v38, %v1003_v36  ;;  %v1085_v44 = vadd.f32 %v1081_v38, %v1004_v37 }
 0x571   :  { %v1086_v57 = vmax.f32 %v1082_v41, 0.0  ;;  %v1087_v46 = vmax.f32 %v1083_v42, 0.0  ;;  %v1088_v58 = vmax.f32 %v1084_v43, 0.0  ;;  %v1089_v62 = vmax.f32 %v1085_v44, 0.0 }
 0x573   :  { %v1095_v50 = vmul.f32 %v1091_v45, %v1087_v46  ;;  %v1094_v51 = vmul.f32 %v1090_v52, %v1086_v57  ;;  %v1096_v1 = vmul.f32 %v1092_v49, %v1088_v58  ;;  %v1097_v11 = vmul.f32 %v1093_v6, %v1089_v62 }
 0x575   :  { %2554 = vmatprep.mubr.msk.f32.mxu1 %vm59_vm0, %v1094_v51  ;;  %2576 = vmatprep.mubr.msk.f32.mxu0 %vm59_vm0, %v1094_v51 }
 0x576   :  { %2555 = vmatmul.mubr.msk.f32.vlgmr.msra.gmra.mrb[14].mxu1 %vm59_vm0, %v1095_v50  ;;  %2577 = vmatmul.mubr.msk.f32.vlgmr.msra.gmra.mrb[12].mxu0 %vm59_vm0, %v1095_v50 }
 0x577   :  { %2846 = vmatpush3.bf16.msra.mxu0 %v2843_v26  ;;  %2557 = vmatprep.mubr.msk.f32.mxu1 %vm59_vm0, %v1096_v1 }
 0x578   :  { %2579 = vmatprep.mubr.msk.f32.mxu0 %vm59_vm0, %v1096_v1  ;;  %2848 = vmatprep.subr.bf16.mxu0 %v2847_v63 }
 0x57a   :  { %2558 = vmatmul.mubr.msk.f32.gmra.mrb[16].mxu1 %vm59_vm0, %v1097_v11  ;;  %2580 = vmatmul.mubr.msk.f32.gmra.mrb[14].mxu0 %vm59_vm0, %v1097_v11 }
 0x57b   :  { %2850 = vmatpush3.bf16.msra.mxu0 %v2847_v63  ;;  %2626 = vmatprep.mubr.msk.f32.mxu0 %vm59_vm0, %v1094_v51 }
 0x57c   :  { %2852 = vmatprep.subr.bf16.mxu0 %v2851_v13  ;;  %2590 = vmatprep.mubr.msk.f32.mxu1 %vm260_vm1, %v3096_v40 }
 0x57f   :  { %2854 = vmatpush3.bf16.msra.mxu0 %v2851_v13 }
 0x580   :  { %2856 = vmatprep.subr.bf16.mxu0 %v2855_v18 }
 0x583   :  { %2858 = vmatpush3.bf16.msra.mxu0 %v2855_v18 }
 0x584   :  { %2867 = vmatprep.subr.bf16.mxu0 %v2914_v9 }
 0x586   :  { %2627 = vmatmul.mubr.msk.f32.vlgmr.msra.gmra.mrb[16].mxu0 %vm59_vm0, %v1095_v50 }
 0x587   :  { %2629 = vmatprep.mubr.msk.f32.mxu0 %vm59_vm0, %v1096_v1  ;;  %2869 = vmatpush3.bf16.msra.mxu0 %v3183_v8 }
 0x588   :  { %2870 = vmatprep.subr.bf16.mxu0 %v2914_v9 }
 0x58a   :  { %2630 = vmatmul.mubr.msk.f32.gmra.mrb[18].mxu0 %vm59_vm0, %v1097_v11 }
 0x58b   :  { %2872 = vmatpush3.bf16.msra.mxu0 %v3194_v12  ;;  %2662 = vmatprep.mubr.msk.f32.mxu0 %vm2915_vm2, %v2916_v20 }
 0x58c   :  { %2873 = vmatprep.subr.bf16.mxu0 %v2914_v9 }
 0x58f   :  { %2875 = vmatpush3.bf16.msra.mxu0 %v3204_v15 }
 0x590   :  { %2876 = vmatprep.subr.bf16.mxu0 %v2914_v9 }
 0x593   :  { %2878 = vmatpush3.bf16.msra.mxu0 %v3214_v19 }
 0x594   :  { %2689 = vmatprep.subr.mxu0 %v2916_v20 }
 0x649   :  { %v2556_v40 = vpop.f32.mrb[14].mxu1  ;;  %v2578_v22 = vpop.f32.mrb[12].mxu0 }
 0x64a   :  { %v1184_v23 = vpop.f32.mrb[15].mxu1  ;;  %v1278_v24 = vpop.f32.mrb[13].mxu0 }
 0x64b   :  { %v2835_v25 = vpack.c.bf16 %v2556_v40, %v1184_v23  ;;  %v2827_v26 = vpack.c.bf16 %v2578_v22, %v1278_v24 }
 0x64d   :  { %v2559_v27 = vpop.f32.mrb[16].mxu1  ;;  %v2581_v28 = vpop.f32.mrb[14].mxu0  ;;  %2828 = vmatprep.subr.bf16.mxu1 %v2827_v26 }
 0x64e   :  { %v1194_v29 = vpop.f32.mrb[17].mxu1  ;;  %v1288_v32 = vpop.f32.mrb[15].mxu0  ;;  %2830 = vmatpush3.bf16.msra.mxu1 %v2827_v26 }
 0x64f   :  { %v2839_v33 = vpack.c.bf16 %v2559_v27, %v1194_v29  ;;  %v2831_v34 = vpack.c.bf16 %v2581_v28, %v1288_v32  ;;  %v1650_v32 = vld [vmem:[%s3511_s8] sm:$0x1] }
 0x651   :  { %2832 = vmatprep.subr.bf16.mxu1 %v2831_v34 }
 0x652   :  { %2834 = vmatpush3.bf16.msra.mxu1 %v2831_v34 }
 0x653   :  { %2836 = vmatprep.subr.bf16.mxu1 %v2835_v25 }
 0x655   :  { %2591 = vmatmul.mubr.msk.f32.vlgmr.msra.gmra.mrb[18].mxu1 %vm260_vm1, %v3103_v53 }
 0x656   :  { %2838 = vmatpush3.bf16.msra.mxu1 %v2835_v25  ;;  %2593 = vmatprep.mubr.msk.f32.mxu1 %vm260_vm1, %v3108_v54 }
 0x657   :  { %2840 = vmatprep.subr.bf16.mxu1 %v2839_v33 }
 0x659   :  { %v2628_v36 = vpop.f32.mrb[16].mxu0  ;;  %2594 = vmatmul.mubr.msk.f32.gmra.mrb[20].mxu1 %vm260_vm1, %v3117_v55 }
 0x65a   :  { %v1542_v37 = vpop.f32.mrb[17].mxu0  ;;  %2842 = vmatpush3.bf16.msra.mxu1 %v2839_v33  ;;  %2604 = vmatprep.mubr.msk.f32.mxu1 %vm260_vm1, %v3122_v56 }
 0x65b   :  { %v2859_v38 = vpack.c.bf16 %v2628_v36, %v1542_v37  ;;  %v1651_v36 = vld [vmem:[%s3512_s9] sm:$0x1] }
 0x65d   :  { %v2631_v39 = vpop.f32.mrb[18].mxu0  ;;  %2860 = vmatprep.subr.bf16.mxu1 %v2859_v38  ;;  %2605 = vmatmul.mubr.msk.f32.vlgmr.msra.gmra.mrb[18].mxu1 %vm260_vm1, %v3131_v59 }
 0x65e   :  { %v1552_v53 = vpop.f32.mrb[19].mxu0  ;;  %2862 = vmatpush3.bf16.msra.mxu1 %v2859_v38  ;;  %2607 = vmatprep.mubr.msk.f32.mxu1 %vm260_vm1, %v3136_v61 }
 0x65f   :  { %v2863_v54 = vpack.c.bf16 %v2631_v39, %v1552_v53 }
 0x661   :  { %2864 = vmatprep.subr.bf16.mxu1 %v2863_v54  ;;  %2608 = vmatmul.mubr.msk.f32.gmra.mrb[20].mxu1 %vm260_vm1, %v3145_v0 }
 0x662   :  { %2866 = vmatpush3.bf16.msra.mxu1 %v2863_v54  ;;  %2640 = vmatprep.mubr.msk.f32.mxu1 %vm260_vm1, %v3150_v2 }
 0x663   :  { %2665 = vmatprep.subr.mxu1 %v2916_v20 }
 0x665   :  { %2641 = vmatmul.mubr.msk.f32.vlgmr.msra.gmra.mrb[18].mxu1 %vm260_vm1, %v3159_v3 }
 0x666   :  { %2643 = vmatprep.mubr.msk.f32.mxu1 %vm260_vm1, %v3164_v4  ;;  %2666 = vmatpush3.msk.msra.mxu1 %vm748_vm3, %v3226_v21 }
 0x667   :  { %2879 = vmatprep.subr.bf16.mxu1 %v2914_v9 }
 0x669   :  { %2644 = vmatmul.mubr.msk.f32.gmra.mrb[20].mxu1 %vm260_vm1, %v3173_v5 }
 0x66a   :  { %2667 = vmatprep.mubr.msk.f32.mxu1 %vm2915_vm2, %v2916_v20 }
 0x738   :  { %v2642_v55 = vpop.f32.mrb[18].mxu1 }
 0x739   :  { %v1653_v56 = vsel %vm59_vm0, %v2642_v55, 0.0  ;;  %v1627_v59 = vpop.f32.mrb[19].mxu1 }
 0x73a   :  { %v1652_v61 = vsel %vm59_vm0, %v1627_v59, 0.0 }
 0x73b   :  { %v1654_v0 = vadd.f32 %v1653_v56, %v1652_v61 }
 0x73c   :  { %v2645_v2 = vpop.f32.mrb[20].mxu1 }
 0x73d   :  { %v1637_v3 = vpop.f32.mrb[21].mxu1  ;;  %v1657_v42 = vsel %vm59_vm0, %v2645_v2, 0.0 }
 0x73e   :  { %v1655_v4 = vsel %vm59_vm0, %v1637_v3, 0.0 }
 0x73f   :  { %v1656_v41 = vadd.f32 %v1655_v4, %v1654_v0 }
 0x741   :  { %v1658_v43 = vadd.f32 %v1657_v42, %v1656_v41 }
 0x743   :  { %v1659_v44 = vrot.slane %v1658_v43, 4 }
 0x745   :  { %v1660_v5 = vadd.f32 %v1659_v44, %v1658_v43  ;;  %v2205_v44 = vld [vmem:[%s3510_s10 + $0x20] sm:$0xff] }
 0x747   :  { %v1661_v45 = vrot.slane %v1660_v5, 2 }
 0x749   :  { %v1662_v52 = vadd.f32 %v1661_v45, %v1660_v5  ;;  %v2207_v5 = vld [vmem:[%s3510_s10 + $0x30] sm:$0xff] }
 0x74b   :  { %v1663_v57 = vrot.slane %v1662_v52, 1 }
 0x74d   :  { %v1664_v46 = vadd.f32 %v1663_v57, %v1662_v52 }
 0x74f   :  { %2663 = vmatmul.mubr.msk.f32.vlgmr.msra.gmra.mrb[20].mxu0 %vm59_vm0, %v1664_v46 }
 0x750   :  { %2690 = vmatpush3.msk.msra.mxu0 %vm748_vm3, %v3226_v21  ;;  %2691 = vmatprep.mubr.msk.f32.mxu0 %vm2915_vm2, %v2916_v20 }
 0x751   :  { %2694 = vmatprep.subr.mxu0 %v2916_v20 }
 0x822   :  { %v1734_v58 = vpop.f32.mrb[20].mxu0 }
 0x823   :  { %v1738_v60 = vmul.f32 0.001953125, %v1734_v58  ;;  %v2664_v47 = vpop.f32.mrb[21].mxu0 }
 0x825   :  { %2668 = vmatmul.mubr.msk.f32.vlgmr.msra.gmra.mrb[22].mxu1 %vm744_vm4, %v1738_v60 }
 0x826   :  { %2881 = vmatpush3.bf16.msra.mxu1 %v3183_v8  ;;  %2686 = vmatprep.mubr.msk.f32.mxu1 %vm2915_vm2, %v2916_v20 }
 0x827   :  { %2882 = vmatprep.subr.bf16.mxu1 %v2914_v9 }
 0x82a   :  { %2884 = vmatpush3.bf16.msra.mxu1 %v3194_v12 }
 0x82b   :  { %2885 = vmatprep.subr.bf16.mxu1 %v2914_v9 }
 0x82e   :  { %2887 = vmatpush3.bf16.msra.mxu1 %v3204_v15 }
 0x82f   :  { %2888 = vmatprep.subr.bf16.mxu1 %v2914_v9 }
 0x832   :  { %2890 = vmatpush3.bf16.msra.mxu1 %v3214_v19 }
 0x8f8   :  { %v1808_v49 = vpop.f32.mrb[22].mxu1 }
 0x8f9   :  { %v1815_v50 = vrot.slane %v1808_v49, %v3251_v48  ;;  %v2669_v51 = vpop.f32.mrb[23].mxu1 }
 0x8fb   :  { %v1816_v8 = vsub.f32 %v1627_v59, %v1815_v50  ;;  %v1817_v62 = vsub.f32 %v2642_v55, %v1815_v50  ;;  %v1818_v63 = vsub.f32 %v1637_v3, %v1815_v50  ;;  %v1819_v1 = vsub.f32 %v2645_v2, %v1815_v50 }
 0x8fd   :  { %v1820_v6 = vmul.f32 %v1816_v8, %v1816_v8  ;;  %v1821_v7 = vmul.f32 %v1817_v62, %v1817_v62  ;;  %v1822_v10 = vmul.f32 %v1818_v63, %v1818_v63  ;;  %v1823_v12 = vmul.f32 %v1819_v1, %v1819_v1 }
 0x8ff   :  { %v1824_v11 = vsel %vm59_vm0, %v1820_v6, 0.0  ;;  %v1825_v15 = vsel %vm59_vm0, %v1821_v7, 0.0  ;;  %v1827_v9 = vsel %vm59_vm0, %v1822_v10, 0.0  ;;  %v1829_v14 = vsel %vm59_vm0, %v1823_v12, 0.0 }
 0x900   :  { %v1826_v13 = vadd.f32 %v1825_v15, %v1824_v11 }
 0x902   :  { %v1828_v19 = vadd.f32 %v1827_v9, %v1826_v13 }
 0x904   :  { %v1830_v17 = vadd.f32 %v1829_v14, %v1828_v19 }
 0x906   :  { %v1831_v18 = vrot.slane %v1830_v17, 4 }
 0x908   :  { %v1832_v40 = vadd.f32 %v1831_v18, %v1830_v17 }
 0x90a   :  { %v1833_v22 = vrot.slane %v1832_v40, 2 }
 0x90c   :  { %v1834_v23 = vadd.f32 %v1833_v22, %v1832_v40 }
 0x90e   :  { %v1835_v24 = vrot.slane %v1834_v23, 1 }
 0x910   :  { %v1836_v25 = vadd.f32 %v1835_v24, %v1834_v23 }
 0x912   :  { %2687 = vmatmul.mubr.msk.f32.vlgmr.msra.gmra.mrb[24].mxu1 %vm59_vm0, %v1836_v25 }
 0x9e5   :  { %v1906_v26 = vpop.f32.mrb[24].mxu1 }
 0x9e6   :  { %v1910_v27 = vmul.f32 0.001953125, %v1906_v26  ;;  %v2688_v28 = vpop.f32.mrb[25].mxu1 }
 0x9e8   :  { %v1911_v29 = vadd.f32 1e-05, %v1910_v27 }
 0x9ea   :  { %2912 = vrsqrt.f32 %v1911_v29 }
 0x9f4   :  { %v2913_v33 = vpop.eup %2912 }
 0x9f5   :  { %v1913_v34 = vmul.f32 %v2913_v33, %v1650_v32 }
 0x9f7   :  { %2692 = vmatmul.mubr.msk.f32.vlgmr.msra.gmra.mrb[22].mxu0 %vm744_vm4, %v1913_v34 }
 0x9f8   :  { %2695 = vmatpush3.msk.msra.mxu0 %vm748_vm3, %v3226_v21  ;;  %2696 = vmatprep.mubr.msk.f32.mxu0 %vm2915_vm2, %v2916_v20 }
 0x9fb   :  { %2697 = vmatmul.mubr.msk.f32.vlgmr.msra.gmra.mrb[24].mxu0 %vm744_vm4, %v1651_v36 }
 0xaca   :  { %v1983_v37 = vpop.f32.mrb[22].mxu0 }
 0xacb   :  { %v1990_v38 = vrot.slane %v1983_v37, %v3251_v48  ;;  %v2693_v39 = vpop.f32.mrb[23].mxu0 }
 0xacd   :  { %v1991_v53 = vmul.f32 %v1990_v38, %v1816_v8  ;;  %v1992_v55 = vmul.f32 %v1990_v38, %v1817_v62  ;;  %v1993_v56 = vmul.f32 %v1990_v38, %v1818_v63  ;;  %v1994_v59 = vmul.f32 %v1990_v38, %v1819_v1 }
 0xace   :  { %v2064_v54 = vpop.f32.mrb[24].mxu0 }
 0xacf   :  { %v2071_v21 = vrot.slane %v2064_v54, %v3251_v48  ;;  %v2698_v61 = vpop.f32.mrb[25].mxu0  ;;  %v2206_v48 = vld [vmem:[%s3510_s10 + $0x28] sm:$0xff] }
 0xad1   :  { %v2072_v0 = vadd.f32 %v2071_v21, %v1991_v53  ;;  %v2073_v20 = vadd.f32 %v2071_v21, %v1992_v55  ;;  %v2074_v2 = vadd.f32 %v2071_v21, %v1993_v56  ;;  %v2075_v3 = vadd.f32 %v2071_v21, %v1994_v59 }
 0xad3   :  { %v2076_v4 = vadd.f32 %v2072_v0, %v3016_v16  ;;  %v2077_v41 = vadd.f32 %v2073_v20, %v3049_v30  ;;  %v2078_v42 = vadd.f32 %v2074_v2, %v3054_v31  ;;  %v2079_v43 = vadd.f32 %v2075_v3, %v3069_v35  ;;  %v2208_v16 = vld [vmem:[%s3510_s10 + $0x38] sm:$0xff] }
 0xad5   :  { %v2080_v30 = vmax.f32 %v2076_v4, 0.0  ;;  %v2081_v31 = vmax.f32 %v2077_v41, 0.0  ;;  %v2082_v45 = vmax.f32 %v2078_v42, 0.0  ;;  %v2083_v35 = vmax.f32 %v2079_v43, 0.0 }
 0xad7   :  { %v2089_v52 = vmul.f32 %v2205_v44, %v2080_v30  ;;  %v2090_v57 = vmul.f32 %v2206_v48, %v2081_v31  ;;  %v2091_v46 = vmul.f32 %v2207_v5, %v2082_v45  ;;  %v2092_v58 = vmul.f32 %v2208_v16, %v2083_v35 }
 0xad9   :  { %2093 = vst.msk [vmem:[%s3513_s11] sm:$0xff] %vm59_vm0, %v2089_v52  ;;  %2094 = vst.msk [vmem:[%s3513_s11 + $0x8] sm:$0xff] %vm59_vm0, %v2090_v57 }
 0xada   :  { %2095 = vst.msk [vmem:[%s3513_s11 + $0x10] sm:$0xff] %vm59_vm0, %v2091_v46  ;;  %2096 = vst.msk [vmem:[%s3513_s11 + $0x18] sm:$0xff] %vm59_vm0, %v2092_v58 }

</bundles_post_ra>
